<compile_context>
chip_gen: v7x
topology: tpu7x:2x2x1
jax: 0.10.0
libtpu: 0.0.40
codegen_flags: <defaults>
</compile_context>

<pallas_src>
import jax
import jax.numpy as jnp
from jax.experimental import pallas as pl
from jax.experimental.pallas import tpu as pltpu


def _round_up(x, m):
    return (x + m - 1) // m * m


def _pad2d(arr, r0, r1):
    p0, p1 = r0 - arr.shape[0], r1 - arr.shape[1]
    if p0 or p1:
        arr = jnp.pad(arr, ((0, p0), (0, p1)))
    return arr


def _lora_linear_kernel(x_ref, w0t_ref, bias_ref, down_ref, bupt_ref,
                        o_ref, acc_ref):
    k = pl.program_id(2)

    @pl.when(k == 0)
    def _init():
        # Fold the bias into the accumulator init (no extra (tm, tn) VPU add
        # in the epilogue, broadcast stays out of the K loop).
        acc_ref[...] = jnp.broadcast_to(
            bias_ref[...].astype(jnp.float32), acc_ref.shape)

    # Base path: x (tm, tk) bf16 @ W0^T (tk, tn) bf16, f32 accumulation.
    # Plain contraction on pre-transposed weights -> no in-kernel transpose.
    acc_ref[...] += jnp.dot(x_ref[...], w0t_ref[...],
                            preferred_element_type=jnp.float32)

    @pl.when(k == pl.num_programs(2) - 1)
    def _finish():
        # Rank-R up-projection of the precomputed LoRA "down" activations.
        # bf16 operands (single MXU pass), f32 accumulation; scale alpha/rank
        # is already folded into bupt at weight-prep time.
        lora = jnp.dot(down_ref[...], bupt_ref[...],
                       preferred_element_type=jnp.float32)
        o_ref[...] = (acc_ref[...] + lora).astype(o_ref.dtype)


def prepare_lora_params(w0, b0, a_down, b_up, *, alpha, rank,
                        tn=512, tk=2048, param_dtype=jnp.bfloat16):
    """One-time (init-time) weight layout / dtype preparation.

    w0: (N, K); b0: (N,); a_down: (R, K); b_up: (N, R).
    Returns pre-transposed, tile-padded, bf16 parameters so the per-call path
    never pays a weight pad / transpose / cast HBM round trip.
    """
    N, K = w0.shape
    R = a_down.shape[0]
    scaling = float(alpha) / float(rank)

    tn = min(tn, _round_up(N, 128))
    tk = min(tk, _round_up(K, 128))
    Np, Kp = _round_up(N, tn), _round_up(K, tk)

    w0_t = _pad2d(jnp.transpose(w0), Kp, Np).astype(param_dtype)        # (Kp, Np)
    a_t = jnp.transpose(a_down).astype(param_dtype)                     # (K,  R)
    b_up_t = _pad2d(jnp.transpose(b_up) * scaling, R, Np).astype(param_dtype)  # (R, Np)
    bias = jnp.pad(b0, (0, Np - N)).astype(jnp.float32).reshape(1, Np)  # (1, Np)

    return dict(w0_t=w0_t, a_t=a_t, b_up_t=b_up_t, bias=bias,
                N=N, K=K, R=R, tn=tn, tk=tk, Np=Np, Kp=Kp)


def lora_linear(x, params, *, tm=256):
    """LoRALinear forward. x: (..., K); params from prepare_lora_params."""
    lead_shape = x.shape[:-1]
    K = x.shape[-1]
    assert K == params["K"], "in_features mismatch"
    x2d = x.reshape(-1, K)
    M = x2d.shape[0]
    N, R = params["N"], params["R"]
    tn, tk, Np, Kp = params["tn"], params["tk"], params["Np"], params["Kp"]

    x_bf = x2d.astype(jnp.bfloat16)

    # LoRA down projection precomputed once over x (thin (M,K)x(K,R) matmul)
    # so the kernel never re-pushes the (tm, tk) x tile through the MXU for
    # every N tile.
    down = jnp.dot(x_bf, params["a_t"],
                   preferred_element_type=jnp.float32).astype(jnp.bfloat16)

    # Clamp row tile to the (sublane-aligned) M; pad x/down only if ragged.
    tm = min(tm, _round_up(M, 8))
    Mp = _round_up(M, tm)
    x_p = _pad2d(x_bf, Mp, Kp)
    down_p = _pad2d(down, Mp, R)

    grid = (Mp // tm, Np // tn, Kp // tk)

    out_p = pl.pallas_call(
        _lora_linear_kernel,
        out_shape=jax.ShapeDtypeStruct((Mp, Np), x.dtype),
        grid_spec=pltpu.PrefetchScalarGridSpec(
            num_scalar_prefetch=0,
            grid=grid,
            in_specs=[
                pl.BlockSpec((tm, tk), lambda i, j, k: (i, k)),   # x        (M, K)
                pl.BlockSpec((tk, tn), lambda i, j, k: (k, j)),   # W0^T     (K, N)
                pl.BlockSpec((1, tn), lambda i, j, k: (0, j)),    # bias     (1, N)
                pl.BlockSpec((tm, R), lambda i, j, k: (i, 0)),    # down     (M, R)
                pl.BlockSpec((R, tn), lambda i, j, k: (0, j)),    # (B*s)^T  (R, N)
            ],
            out_specs=pl.BlockSpec((tm, tn), lambda i, j, k: (i, j)),
            scratch_shapes=[
                pltpu.VMEM((tm, tn), jnp.float32),   # base+bias accumulator
            ],
        ),
        compiler_params=pltpu.CompilerParams(
            dimension_semantics=("parallel", "parallel", "arbitrary")),
    )(x_p, params["w0_t"], params["bias"], down_p, params["b_up_t"])

    return out_p[:M, :N].reshape(*lead_shape, N)


def _reference(x2d, w0, b0, a_down, b_up, alpha, rank):
    scaling = alpha / rank
    return x2d @ w0.T + b0[None, :] + ((x2d @ a_down.T) @ b_up.T) * scaling


if __name__ == "__main__":
    key = jax.random.PRNGKey(0)

    # --- Test 1: shapes implied by the module (single-tile grid) -------------
    k_x, k_w, k_b, k_a, k_up, key = jax.random.split(key, 6)
    batch, seq = 2, 8
    in_features, out_features, rank, alpha = 32, 32, 4, 1

    x = jax.random.normal(k_x, (batch, seq, in_features), dtype=jnp.float32)
    # Note: the module zero-inits lora_up; use small nonzero values so the
    # LoRA path is numerically exercised (semantics identical).
    w0 = jax.random.normal(k_w, (out_features, in_features), jnp.float32) * 0.05
    b0 = jax.random.normal(k_b, (out_features,), jnp.float32) * 0.05
    a_down = jax.random.normal(k_a, (rank, in_features), jnp.float32) * 0.1
    b_up = jax.random.normal(k_up, (out_features, rank), jnp.float32) * 0.1

    params = prepare_lora_params(w0, b0, a_down, b_up, alpha=alpha, rank=rank)
    out = lora_linear(x, params)
    jax.block_until_ready(out)
    ref = _reference(x.reshape(-1, in_features), w0, b0, a_down, b_up,
                     alpha, rank).reshape(batch, seq, out_features)
    assert jnp.allclose(out, ref, atol=2e-2, rtol=2e-2), "test1 mismatch"

    # --- Test 2: multi-tile grid (exercises K accumulation + N/M tiling) -----
    k_x, k_w, k_b, k_a, k_up, key = jax.random.split(key, 6)
    batch2, seq2 = 3, 16
    in2, out2, rank2, alpha2 = 256, 384, 8, 16

    x2 = jax.random.normal(k_x, (batch2, seq2, in2), dtype=jnp.float32)
    w02 = jax.random.normal(k_w, (out2, in2), jnp.float32) * 0.05
    b02 = jax.random.normal(k_b, (out2,), jnp.float32) * 0.05
    a2 = jax.random.normal(k_a, (rank2, in2), jnp.float32) * 0.1
    bu2 = jax.random.normal(k_up, (out2, rank2), jnp.float32) * 0.1

    # Small tile overrides -> grid (3, 3, 2): validates the pipelined K loop,
    # bias-in-accumulator init and the k == last LoRA epilogue across tiles.
    params2 = prepare_lora_params(w02, b02, a2, bu2, alpha=alpha2, rank=rank2,
                                  tn=128, tk=128)
    out_2 = lora_linear(x2, params2, tm=16)
    jax.block_until_ready(out_2)
    ref2 = _reference(x2.reshape(-1, in2), w02, b02, a2, bu2,
                      alpha2, rank2).reshape(batch2, seq2, out2)
    assert jnp.allclose(out_2, ref2, atol=2e-2, rtol=2e-2), "test2 mismatch"

    print("KERNEL_OK")
</pallas_src>

<mosaic_0001>
module attributes {stable_mosaic.version = 11 : i64} {
  func.func @_lora_linear_kernel(%arg0: i32, %arg1: i32, %arg2: i32, %arg3: memref<16x128xbf16, #tpu.memory_space<vmem>>, %arg4: memref<128x128xbf16, #tpu.memory_space<vmem>>, %arg5: memref<1x128xf32, #tpu.memory_space<vmem>>, %arg6: memref<16x4xbf16, #tpu.memory_space<vmem>>, %arg7: memref<4x128xbf16, #tpu.memory_space<vmem>>, %arg8: memref<16x128xf32, #tpu.memory_space<vmem>>, %arg9: memref<16x128xf32, #tpu.memory_space<vmem>>) attributes {dimension_semantics = [#tpu.dimension_semantics<parallel>, #tpu.dimension_semantics<parallel>, #tpu.dimension_semantics<arbitrary>], iteration_bounds = array<i64: 1, 1, 1>, scalar_prefetch = 0 : i64, scratch_operands = 1 : i64, tpu.core_type = #tpu.core_type<tc>, window_params = [{transform_indices = @transform_0, window_bounds = array<i64: 16, 128>}, {transform_indices = @transform_1, window_bounds = array<i64: 128, 128>}, {transform_indices = @transform_2, window_bounds = array<i64: 1, 128>}, {transform_indices = @transform_3, window_bounds = array<i64: 16, 4>}, {transform_indices = @transform_4, window_bounds = array<i64: 4, 128>}, {transform_indices = @transform_5, window_bounds = array<i64: 16, 128>}]} {
    %c0_i32 = arith.constant 0 : i32
    %0 = arith.cmpi eq, %arg2, %c0_i32 : i32
    %1 = arith.extui %0 : i1 to i32
    %c0_i32_0 = arith.constant 0 : i32
    %2 = arith.cmpi ne, %1, %c0_i32_0 : i32
    scf.if %2 {
      %c0_10 = arith.constant 0 : index
      %c0_11 = arith.constant 0 : index
      %12 = vector.load %arg5[%c0_10, %c0_11] : memref<1x128xf32, #tpu.memory_space<vmem>>, vector<1x128xf32>
      %13 = vector.shape_cast %12 : vector<1x128xf32> to vector<1x128xf32>
      %14 = vector.broadcast %13 : vector<1x128xf32> to vector<16x128xf32>
      %c0_12 = arith.constant 0 : index
      %c0_13 = arith.constant 0 : index
      %15 = vector.load %arg9[%c0_12, %c0_13] : memref<16x128xf32, #tpu.memory_space<vmem>>, vector<16x128xf32>
      tpu.vector_store %arg9[%c0_12, %c0_13], %14 {strides = array<i32>} : memref<16x128xf32, #tpu.memory_space<vmem>>, vector<16x128xf32>,
    } else {
    }
    %c0 = arith.constant 0 : index
    %c0_1 = arith.constant 0 : index
    %3 = vector.load %arg9[%c0, %c0_1] : memref<16x128xf32, #tpu.memory_space<vmem>>, vector<16x128xf32>
    %c0_2 = arith.constant 0 : index
    %c0_3 = arith.constant 0 : index
    %4 = vector.load %arg3[%c0_2, %c0_3] : memref<16x128xbf16, #tpu.memory_space<vmem>>, vector<16x128xbf16>
    %c0_4 = arith.constant 0 : index
    %c0_5 = arith.constant 0 : index
    %5 = vector.load %arg4[%c0_4, %c0_5] : memref<128x128xbf16, #tpu.memory_space<vmem>>, vector<128x128xbf16>
    %cst = arith.constant dense<0.000000e+00> : vector<16x128xf32>
    %6 = tpu.matmul %4, %5, %cst {dimension_numbers = #tpu.dot_dimension_numbers<[1], [0], [0], [1], [0, 0, 1, 1], [], []>} : vector<16x128xbf16>, vector<128x128xbf16>, vector<16x128xf32> -> vector<16x128xf32>
    %7 = arith.addf %3, %6 : vector<16x128xf32>
    %c0_6 = arith.constant 0 : index
    %c0_7 = arith.constant 0 : index
    %8 = vector.load %arg9[%c0_6, %c0_7] : memref<16x128xf32, #tpu.memory_space<vmem>>, vector<16x128xf32>
    tpu.vector_store %arg9[%c0_6, %c0_7], %7 {strides = array<i32>} : memref<16x128xf32, #tpu.memory_space<vmem>>, vector<16x128xf32>,
    %c0_i32_8 = arith.constant 0 : i32
    %9 = arith.cmpi eq, %arg2, %c0_i32_8 : i32
    %10 = arith.extui %9 : i1 to i32
    %c0_i32_9 = arith.constant 0 : i32
    %11 = arith.cmpi ne, %10, %c0_i32_9 : i32
    scf.if %11 {
      %c0_10 = arith.constant 0 : index
      %c0_11 = arith.constant 0 : index
      %12 = vector.load %arg6[%c0_10, %c0_11] : memref<16x4xbf16, #tpu.memory_space<vmem>>, vector<16x4xbf16>
      %c0_12 = arith.constant 0 : index
      %c0_13 = arith.constant 0 : index
      %13 = vector.load %arg7[%c0_12, %c0_13] : memref<4x128xbf16, #tpu.memory_space<vmem>>, vector<4x128xbf16>
      %cst_14 = arith.constant dense<0.000000e+00> : vector<16x128xf32>
      %14 = tpu.matmul %12, %13, %cst_14 {dimension_numbers = #tpu.dot_dimension_numbers<[1], [0], [0], [1], [0, 0, 1, 1], [], []>} : vector<16x4xbf16>, vector<4x128xbf16>, vector<16x128xf32> -> vector<16x128xf32>
      %c0_15 = arith.constant 0 : index
      %c0_16 = arith.constant 0 : index
      %15 = vector.load %arg9[%c0_15, %c0_16] : memref<16x128xf32, #tpu.memory_space<vmem>>, vector<16x128xf32>
      %16 = arith.addf %15, %14 : vector<16x128xf32>
      %c0_17 = arith.constant 0 : index
      %c0_18 = arith.constant 0 : index
      %17 = vector.load %arg8[%c0_17, %c0_18] : memref<16x128xf32, #tpu.memory_space<vmem>>, vector<16x128xf32>
      tpu.vector_store %arg8[%c0_17, %c0_18], %16 {strides = array<i32>} : memref<16x128xf32, #tpu.memory_space<vmem>>, vector<16x128xf32>,
    } else {
    }
    return
  }
  func.func @transform_0(%arg0: i32, %arg1: i32, %arg2: i32) -> (i32, i32) {
    %c0_i32 = arith.constant 0 : i32
    return %arg0, %arg2 : i32, i32
  }
  func.func @transform_1(%arg0: i32, %arg1: i32, %arg2: i32) -> (i32, i32) {
    %c0_i32 = arith.constant 0 : i32
    return %arg2, %arg1 : i32, i32
  }
  func.func @transform_2(%arg0: i32, %arg1: i32, %arg2: i32) -> (i32, i32) {
    %c0_i32 = arith.constant 0 : i32
    %c0_i32_0 = arith.constant 0 : i32
    return %c0_i32, %arg1 : i32, i32
  }
  func.func @transform_3(%arg0: i32, %arg1: i32, %arg2: i32) -> (i32, i32) {
    %c0_i32 = arith.constant 0 : i32
    %c0_i32_0 = arith.constant 0 : i32
    return %arg0, %c0_i32 : i32, i32
  }
  func.func @transform_4(%arg0: i32, %arg1: i32, %arg2: i32) -> (i32, i32) {
    %c0_i32 = arith.constant 0 : i32
    %c0_i32_0 = arith.constant 0 : i32
    return %c0_i32, %arg1 : i32, i32
  }
  func.func @transform_5(%arg0: i32, %arg1: i32, %arg2: i32) -> (i32, i32) {
    %c0_i32 = arith.constant 0 : i32
    return %arg0, %arg1 : i32, i32
  }
}

</mosaic_0001>

<bundles_post_ra>
// kernel: tpu_custom_call.1
= control target key start
LH: loop header
LB: loop body
LE: loop exit
PB: predicated region body
PF: predicated region fallthrough
CT: control target
= control target key end

     0   :  { %10 = vsyncpa [#allocation4], 0  ;;  %s444_s0 = inlined_call_operand.vmem [shape: bf16[16,128], index: 0, kind: input, shape index: {}]   ;;  %s445_s1 = inlined_call_operand.hbm [shape: bf16[128,128], index: 1, kind: input, shape index: {}]   ;;  %s446_s2 = inlined_call_operand.vmem [shape: f32[1,128], index: 2, kind: input, shape index: {}]   ;;  %s447_s3 = inlined_call_operand.vmem [shape: bf16[16,4], index: 3, kind: input, shape index: {}]   ;;  %s448_s4 = inlined_call_operand.vmem [shape: bf16[4,128], index: 4, kind: input, shape index: {}]   ;;  %s449_s5 = inlined_call_operand.hbm [shape: f32[16,128], index: 5, kind: output, shape index: {}]  }
   0x1   :  { %11 = vsyncpa [#allocation5], 0  ;;  %s370_s18 = smov [#allocation3]   ;;  %s322_s22 = scalar_lea.hbm %s445_s1, 1024 }
   0x2   :  { %s19_s19 = sshll.u32 %s370_s18, 4  ;;  %p323_p0 = scmp.ne.s32.totalorder %s445_s1, %s322_s22  ;;  %s20_s19 = int_to_ptr.vmem [resolvable:$true] %s19_s19 }
   0x3   :  { %p326_p1 = scmp.lt.u32.totalorder %s322_s22, %s445_s1 }
   0x5   :  { %p328_p2 = pnand %p326_p1, %p323_p0 }
   0x7   :  { %331 = shalt.err (!%p328_p2)
}
   0x8   :  { %s332_s27 = scalar_lea.vmem %s20_s19, 1024  ;;  %p337_p4 = scmp.lt.s32.totalorder %s20_s19, %s20_s19 }
   0x9   :  { %p333_p3 = scmp.ne.s32.totalorder %s20_s19, %s332_s27  ;;  %p338_p5 = scmp.lt.s32.totalorder %s332_s27, %s332_s27 }
   0xb   :  { %p339_p6 = por %p338_p5, %p337_p4 }
   0xd   :  { %p340_p7 = pnand %p339_p6, %p333_p3 }
   0xf   :  { %343 = shalt.err (!%p340_p7)
}
  0x10   :  { %s371_s28 = smov 64   ;;  %s372_s29 = smov 4  }
  0x11   :  { %25 = dma.hbm_to_vmem [thread:$0]  %s445_s1, 1024, %s20_s19, [#allocation4], %s371_s28, %s371_s28, %s372_s29  }
  0x12   :  { %366 = dma.done.wait [#allocation4], 1024  }
  0x13   :  { %367 = vsyncadd [#allocation4], 4294966272  ;;  %v373_v0 = vmov 0.0   ;;  %vm374_vm0 = vmmov 0   ;;  %v312_v1 = vld [vmem:[#allocation3] sm:$0xff]   ;;  %v313_v2 = vld [vmem:[#allocation3 + $0x8] sm:$0xff]  }
  0x14   :  { %274 = vmatprep.subr.bf16.mxu1 %v373_v0  ;;  %294 = vmatprep.subr.bf16.mxu0 %v373_v0  ;;  %vm183_vm1 = vcmask 1041408   ;;  %v314_v3 = vld [vmem:[#allocation3 + $0x10] sm:$0xff]   ;;  %v173_v4 = vld [vmem:[%s448_s4] sm:$0x3]  ;;  %vm179_vm2 = vcmask 31744   ;;  %v315_v7 = vld [vmem:[#allocation3 + $0x18] sm:$0xff]  }
  0x15   :  { %296 = vmatprep.mubr.msk.bf16.mxu0 %vm374_vm0, %v373_v0  ;;  %290 = vmatprep.mubr.msk.bf16.mxu1 %vm374_vm0, %v373_v0  ;;  %v185_v5 = vsel %vm183_vm1, %v173_v4, 0  ;;  %v320_v6 = vld [vmem:[%s447_s3] sm:$0xff]   ;;  %v317_v9 = vld [vmem:[#allocation3 + $0x28] sm:$0xff]   ;;  %v318_v10 = vld [vmem:[#allocation3 + $0x30] sm:$0xff]   ;;  %s375_s12 = smov [#allocation6]  }
  0x16   :  { %275 = vmatpush3.bf16.msra.mxu1 %v312_v1  ;;  %295 = vmatpush3.bf16.msra.mxu0 %v185_v5  ;;  %v316_v8 = vld [vmem:[#allocation3 + $0x20] sm:$0xff]   ;;  %v319_v11 = vld [vmem:[#allocation3 + $0x38] sm:$0xff]   ;;  %s239_s13 = sshll.u32 %s375_s12, 4  ;;  %s240_s13 = int_to_ptr.vmem [resolvable:$true] %s239_s13 }
  0x17   :  { %276 = vmatprep.subr.bf16.mxu1 %v373_v0  ;;  %v321_v12 = vld [vmem:[%s444_s0] sm:$0xff]   ;;  %s344_s0 = scalar_lea.vmem %s240_s13, 256  ;;  %p349_p9 = scmp.lt.s32.totalorder %s240_s13, %s240_s13 }
  0x18   :  { %v251_v17 = vld [vmem:[%s446_s2] ss:$0 sm:$0xff]  ;;  %p345_p8 = scmp.ne.s32.totalorder %s240_s13, %s344_s0  ;;  %p350_p10 = scmp.lt.s32.totalorder %s344_s0, %s344_s0 }
  0x19   :  { %297 = vmatmul.mubr.msk.bf16.vlgmr.msra.gmra.mrb[0].mxu0 %vm179_vm2, %v320_v6 }
  0x1a   :  { %277 = vmatpush3.bf16.msra.mxu1 %v313_v2  ;;  %p351_p11 = por %p350_p10, %p349_p9 }
  0x1b   :  { %278 = vmatprep.subr.bf16.mxu1 %v373_v0 }
  0x1c   :  { %p352_p12 = pnand %p351_p11, %p345_p8 }
  0x1e   :  { %279 = vmatpush3.bf16.msra.mxu1 %v314_v3 }
  0x1f   :  { %280 = vmatprep.subr.bf16.mxu1 %v373_v0 }
  0x22   :  { %281 = vmatpush3.bf16.msra.mxu1 %v315_v7 }
  0x23   :  { %282 = vmatprep.subr.bf16.mxu1 %v373_v0 }
  0x26   :  { %283 = vmatpush3.bf16.msra.mxu1 %v316_v8 }
  0x27   :  { %284 = vmatprep.subr.bf16.mxu1 %v373_v0 }
  0x2a   :  { %285 = vmatpush3.bf16.msra.mxu1 %v317_v9 }
  0x2b   :  { %286 = vmatprep.subr.bf16.mxu1 %v373_v0 }
  0x2e   :  { %287 = vmatpush3.bf16.msra.mxu1 %v318_v10 }
  0x2f   :  { %288 = vmatprep.subr.bf16.mxu1 %v373_v0 }
  0x32   :  { %289 = vmatpush3.bf16.msra.mxu1 %v319_v11 }
  0x35   :  { %291 = vmatmul.mubr.bf16.vlgmr.msra.gmra.mrb[0].mxu1 %v321_v12 }
  0xec   :  { %v221_v13 = vpop.f32.mrb[0].mxu0 }
  0xed   :  { %v298_v14 = vpop.f32.mrb[1].mxu0 }
  0xee   :  { %v224_v15 = vpop.f32.mrb[2].mxu0 }
  0xef   :  { %v299_v16 = vpop.f32.mrb[3].mxu0 }
 0x108   :  { %v157_v18 = vpop.f32.mrb[0].mxu1 }
 0x109   :  { %v164_v19 = vadd.f32 %v251_v17, %v157_v18  ;;  %v292_v20 = vpop.f32.mrb[1].mxu1 }
 0x10a   :  { %v160_v21 = vpop.f32.mrb[2].mxu1 }
 0x10b   :  { %v230_v22 = vadd.f32 %v221_v13, %v164_v19  ;;  %v165_v23 = vadd.f32 %v251_v17, %v160_v21  ;;  %v293_v24 = vpop.f32.mrb[3].mxu1 }
 0x10d   :  { %232 = vst [vmem:[#allocation6] sm:$0xff] %v230_v22  ;;  %v231_v25 = vadd.f32 %v224_v15, %v165_v23 }
 0x10f   :  { %233 = vst [vmem:[#allocation6 + $0x8] sm:$0xff] %v231_v25 }
 0x110   :  { %355 = shalt.err (!%p352_p12)
}
 0x111   :  { %s356_s15 = scalar_lea.hbm %s449_s5, 256 }
 0x112   :  { %p357_p13 = scmp.ne.s32.totalorder %s449_s5, %s356_s15  ;;  %p360_p0 = scmp.lt.u32.totalorder %s356_s15, %s449_s5 }
 0x114   :  { %p362_p1 = pnand %p360_p0, %p357_p13 }
 0x116   :  { %365 = shalt.err (!%p362_p1)
}
 0x117   :  { %s376_s20 = smov 128   ;;  %s377_s21 = smov 8  }
 0x118   :  { %245 = dma.vmem_to_hbm [thread:$0]  %s240_s13, 256, %s449_s5, [#allocation5], %s376_s20, %s376_s20, %s377_s21  }
 0x119   :  { %368 = dma.done.wait [#allocation5], 256  }
 0x11a   :  { %369 = vsyncadd [#allocation5], 4294967040 }
 0x11b   :  { %249 = vsyncpa [#allocation4], 1 }
 0x11c   :  { %250 = vsyncpa [#allocation5], 1 }

</bundles_post_ra>
